<compile_context>
chip_gen: v5e
topology: v5e:2x2
jax: 0.10.0
libtpu: 0.0.40
codegen_flags: <defaults>
</compile_context>

<pallas_src>
import functools

import jax
import jax.numpy as jnp
from jax.experimental import pallas as pl
from jax.experimental.pallas import tpu as pltpu


def _round_up(x, m):
    return ((x + m - 1) // m) * m


def _choose_tile(batch, tn_max):
    """Lane tile TN (multiple of 128) and padded batch size."""
    bp = _round_up(max(int(batch), 1), 128)
    # Aim for >=2 grid steps when the batch allows it (v7x has 2 TensorCores),
    # capped at tn_max lanes (~1 MiB f32 per 32768-lane block, double-buffered).
    tn = min(tn_max, _round_up(-(-bp // 2), 128))
    b_pad = _round_up(bp, tn)
    return tn, b_pad


def hyper_kernel(xT_ref, wT_ref, oT_ref):
    # Single MXU push: (out_pad, k_pad) @ (k_pad, TN).  Bias is folded into the
    # ones row of xT, so the epilogue is just the ReLU.  The output store is a
    # full-width, unmasked, lane-dense vst.
    h = jnp.dot(wT_ref[...], xT_ref[...], preferred_element_type=jnp.float32)
    oT_ref[...] = jnp.maximum(h, 0.0)


def prepare_hyper_params(params):
    """Collapse fc1..fc4 into one padded, transposed weight.

    Call once per parameter set and reuse across forwards (caching removes the
    per-call weight-collapse launches that dominate at small batch)."""
    Wc = params["W1"] @ params["W2"] @ params["W3"] @ params["W4"]           # (in, out)
    bc = ((params["b1"] @ params["W2"] + params["b2"]) @ params["W3"]
          + params["b3"]) @ params["W4"] + params["b4"]                      # (1, out)
    Wc_aug = jnp.concatenate([Wc, bc], axis=0)                               # (in+1, out)
    k_aug, out_dim = Wc_aug.shape
    k_pad = _round_up(k_aug, 8)
    out_pad = _round_up(out_dim, 8)
    wcT_pad = jnp.pad(Wc_aug.T.astype(jnp.float32),
                      ((0, out_pad - out_dim), (0, k_pad - k_aug)))          # (out_pad, k_pad)
    return wcT_pad, out_dim


@functools.partial(jax.jit, static_argnames=("out_dim", "tn_max"))
def hypernetwork_forward(leader_action, wcT_pad, *, out_dim, tn_max=32768):
    """leader_action: (B, leader_action_dim) f32.  wcT_pad from prepare_hyper_params."""
    B, in_dim = leader_action.shape
    out_pad, k_pad = wcT_pad.shape

    tn, b_pad = _choose_tile(B, tn_max)

    # Transposed, ones-augmented input: rows = [features..., 1, zero-pad],
    # columns = batch (lane axis).  Padded columns are all-zero -> relu(0)=0.
    x_aug = jnp.concatenate(
        [leader_action.astype(jnp.float32), jnp.ones((B, 1), jnp.float32)], axis=1)
    xT = jnp.pad(x_aug.T, ((0, k_pad - (in_dim + 1)), (0, b_pad - B)))       # (k_pad, b_pad)

    grid = (b_pad // tn,)
    outT = pl.pallas_call(
        hyper_kernel,
        out_shape=jax.ShapeDtypeStruct((out_pad, b_pad), jnp.float32),
        grid=grid,
        in_specs=[
            pl.BlockSpec((k_pad, tn), lambda n: (0, n)),        # xT tiles over batch lanes
            pl.BlockSpec((out_pad, k_pad), lambda n: (0, 0)),   # collapsed weights resident
        ],
        out_specs=pl.BlockSpec((out_pad, tn), lambda n: (0, n)),
        compiler_params=pltpu.CompilerParams(
            dimension_semantics=("parallel",),   # megacore sharding on v7x
        ),
    )(xT, wcT_pad)

    return outT[:out_dim, :B].T


def init_params(key, leader_action_dim, follower_value_dim, hidden_dim=64):
    """Deterministic init mimicking torch.nn.Linear default (U(-1/sqrt(fan_in), +))."""
    dims = [(leader_action_dim, hidden_dim), (hidden_dim, 32),
            (32, 16), (16, follower_value_dim)]
    params = {}
    for idx, (fan_in, fan_out) in enumerate(dims, start=1):
        key, kw, kb = jax.random.split(key, 3)
        bound = 1.0 / jnp.sqrt(jnp.float32(fan_in))
        params[f"W{idx}"] = jax.random.uniform(
            kw, (fan_in, fan_out), jnp.float32, -bound, bound)
        # biases kept 2D (1, fan_out) so they broadcast cleanly.
        params[f"b{idx}"] = jax.random.uniform(
            kb, (1, fan_out), jnp.float32, -bound, bound)
    return params


def reference_forward(leader_action, params):
    # Layer-by-layer (un-collapsed) reference, matching the PyTorch module.
    h = leader_action @ params["W1"] + params["b1"]
    h = h @ params["W2"] + params["b2"]
    h = h @ params["W3"] + params["b3"]
    h = h @ params["W4"] + params["b4"]
    return jnp.maximum(h, 0.0)


if __name__ == "__main__":
    key = jax.random.PRNGKey(0)
    B = 8
    leader_action_dim = 4
    follower_value_dim = 6
    hidden_dim = 64

    key, kp, kx = jax.random.split(key, 3)
    params = init_params(kp, leader_action_dim, follower_value_dim, hidden_dim)
    leader_action = jax.random.normal(kx, (B, leader_action_dim), jnp.float32)

    # Collapse + pad the weight stack once; reuse across forwards.
    wcT_pad, out_dim = prepare_hyper_params(params)

    out = hypernetwork_forward(leader_action, wcT_pad, out_dim=out_dim)
    out = jax.block_until_ready(out)

    ref = reference_forward(leader_action, params)
    assert out.shape == (B, follower_value_dim), out.shape
    # Layer-collapse changes fp rounding order; allow a small tolerance.
    assert jnp.allclose(out, ref, atol=1e-4, rtol=1e-4), "mismatch vs reference"

    print("KERNEL_OK")
</pallas_src>

<mosaic_0001>
module attributes {stable_mosaic.version = 11 : i64} {
  func.func @hyper_kernel(%arg0: i32, %arg1: memref<8x128xf32, #tpu.memory_space<vmem>>, %arg2: memref<8x8xf32, #tpu.memory_space<vmem>>, %arg3: memref<8x128xf32, #tpu.memory_space<vmem>>) attributes {dimension_semantics = [#tpu.dimension_semantics<parallel>], iteration_bounds = array<i64: 1>, scalar_prefetch = 0 : i64, scratch_operands = 0 : i64, tpu.core_type = #tpu.core_type<tc>, window_params = [{transform_indices = @transform_0, window_bounds = array<i64: 8, 128>}, {pipeline_mode = #tpu.pipeline_mode<synchronous>, transform_indices = @transform_1, window_bounds = array<i64: 8, 8>}, {transform_indices = @transform_2, window_bounds = array<i64: 8, 128>}]} {
    %c0 = arith.constant 0 : index
    %c0_0 = arith.constant 0 : index
    %0 = vector.load %arg2[%c0, %c0_0] : memref<8x8xf32, #tpu.memory_space<vmem>>, vector<8x8xf32>
    %c0_1 = arith.constant 0 : index
    %c0_2 = arith.constant 0 : index
    %1 = vector.load %arg1[%c0_1, %c0_2] : memref<8x128xf32, #tpu.memory_space<vmem>>, vector<8x128xf32>
    %cst = arith.constant dense<0.000000e+00> : vector<8x128xf32>
    %2 = tpu.matmul %0, %1, %cst {dimension_numbers = #tpu.dot_dimension_numbers<[1], [0], [0], [1], [0, 0, 1, 1], [], []>} : vector<8x8xf32>, vector<8x128xf32>, vector<8x128xf32> -> vector<8x128xf32>
    %cst_3 = arith.constant 0.000000e+00 : f32
    %3 = vector.broadcast %cst_3 : f32 to vector<8x128xf32>
    %4 = arith.maximumf %2, %3 : vector<8x128xf32>
    %c0_4 = arith.constant 0 : index
    %c0_5 = arith.constant 0 : index
    %5 = vector.load %arg3[%c0_4, %c0_5] : memref<8x128xf32, #tpu.memory_space<vmem>>, vector<8x128xf32>
    tpu.vector_store %arg3[%c0_4, %c0_5], %4 {strides = array<i32>} : memref<8x128xf32, #tpu.memory_space<vmem>>, vector<8x128xf32>,
    return
  }
  func.func @transform_0(%arg0: i32) -> (i32, i32) {
    %c0_i32 = arith.constant 0 : i32
    %c0_i32_0 = arith.constant 0 : i32
    return %c0_i32, %arg0 : i32, i32
  }
  func.func @transform_1(%arg0: i32) -> (i32, i32) {
    %c0_i32 = arith.constant 0 : i32
    %c0_i32_0 = arith.constant 0 : i32
    %c0_i32_1 = arith.constant 0 : i32
    return %c0_i32, %c0_i32_0 : i32, i32
  }
  func.func @transform_2(%arg0: i32) -> (i32, i32) {
    %c0_i32 = arith.constant 0 : i32
    %c0_i32_0 = arith.constant 0 : i32
    return %c0_i32, %arg0 : i32, i32
  }
}

</mosaic_0001>

<bundles_post_ra>
// kernel: hypernetwork_forward.1
= control target key start
LH: loop header
LB: loop body
LE: loop exit
PB: predicated region body
PF: predicated region fallthrough
CT: control target
= control target key end

     0   :  { %vm13_vm0 = vcmask 64512   ;;  %s68_s0 = inlined_call_operand.vmem [shape: f32[8,128], index: 0, kind: input, shape index: {}]   ;;  %s69_s1 = inlined_call_operand.vmem [shape: f32[8,8], index: 1, kind: input, shape index: {}]   ;;  %s70_s2 = inlined_call_operand.vmem [shape: f32[8,128], index: 2, kind: output, shape index: {}]  }
   0x1   :  { %v12_v0 = vld [vmem:[%s68_s0] sm:$0xff] }
   0x2   :  { %v11_v1 = vld [vmem:[%s69_s1] sm:$0xff]  ;;  %32 = vmatpush.msra.mxu0 %v12_v0 }
   0x3   :  { %43 = vmatmul.msk.f32.vlgmr.msra.gmra.mxu0 %vm13_vm0, %v11_v1 }
  0x80   :  { %v34_v2 = vpop.f32.mrf.mxu0 }
  0x81   :  { %v37_v3 = vmax.f32 %v34_v2, 0.0 }
  0x83   :  { %38 = vst [vmem:[%s70_s2] sm:$0xff] %v37_v3 }

</bundles_post_ra>
